<compile_context>
chip_gen: v6e
topology: v6e:2x2x1
jax: 0.10.0
libtpu: 0.0.40
codegen_flags: <defaults>
</compile_context>

<pallas_src>
import jax
import jax.numpy as jnp
from jax.experimental import pallas as pl
from jax.experimental.pallas import tpu as pltpu

HIDDEN = 256          # fixed by the module
ACTION_PAD = 128      # lane-dense output width
TILE_CAP = 512        # max rows per batch tile (tiny VMEM footprint at DQN shapes)


def dqn_mlp_kernel(x_ref, w1_ref, b1_ref, w2_ref, b2_ref, o_ref):
    # In-kernel bf16 cast of the activations (VPU); MXU operands stay bf16.
    x = x_ref[...].astype(jnp.bfloat16)
    # Layer 1: bf16 x @ bf16 W1 -> f32 accumulator on the MXU.
    h = jnp.dot(x, w1_ref[...], preferred_element_type=jnp.float32)
    h = jnp.maximum(h + b1_ref[...], 0.0)          # f32 bias + ReLU on the VPU
    # Layer 2: cast hidden to bf16 for the MXU, accumulate in f32.
    out = jnp.dot(h.astype(jnp.bfloat16), w2_ref[...],
                  preferred_element_type=jnp.float32)
    o_ref[...] = (out + b2_ref[...]).astype(o_ref.dtype)   # (TM, 128) lane-dense


def _choose_tiling(batch, cap=TILE_CAP):
    """Pick (tm, padded_batch).

    Small batch: one tile covering the (8-aligned) batch -> grid=(1,), no
    per-step overhead and (usually) no tail pad.  Large batch: cap tiles at
    `cap` rows and round the tile count up to an even number so the
    'parallel' grid axis can be split across v7x's two TensorCores."""
    b8 = ((batch + 7) // 8) * 8              # sublane alignment
    if b8 <= cap:
        return b8, b8                        # single tile
    n_tiles = -(-b8 // cap)                  # ceil
    if n_tiles % 2:
        n_tiles += 1                         # even tile count for v7x megacore
    tm = ((-(-b8 // n_tiles) + 7) // 8) * 8  # ceil then round up to 8
    return tm, tm * n_tiles


def dqn_forward(x, w1, b1, w2p, b2p, num_actions, tile_cap=TILE_CAP):
    """x: (B, obs_dim) f32. w1: (obs_dim, 256) bf16. b1: (1, 256) f32.
    w2p: (256, 128) bf16 (zero-padded past num_actions). b2p: (1, 128) f32.
    Returns (B, num_actions) f32 Q-values."""
    batch, obs_dim = x.shape
    hidden = w1.shape[1]
    n_pad = w2p.shape[1]

    tm, padded_batch = _choose_tiling(batch, tile_cap)
    if padded_batch != batch:
        # Only hit when batch is not 8-aligned or exceeds the tile cap.
        x = jnp.pad(x, ((0, padded_batch - batch), (0, 0)))

    grid = (padded_batch // tm,)
    flops = 2 * padded_batch * (obs_dim * hidden + hidden * n_pad)
    bytes_accessed = (x.size * 4 + w1.size * 2 + b1.size * 4
                      + w2p.size * 2 + b2p.size * 4 + padded_batch * n_pad * 4)

    out = pl.pallas_call(
        dqn_mlp_kernel,
        out_shape=jax.ShapeDtypeStruct((padded_batch, n_pad), jnp.float32),
        grid=grid,
        in_specs=[
            pl.BlockSpec((tm, obs_dim), lambda i: (i, 0)),       # x streams (f32)
            pl.BlockSpec((obs_dim, hidden), lambda i: (0, 0)),   # W1 resident
            pl.BlockSpec((1, hidden), lambda i: (0, 0)),         # b1 resident
            pl.BlockSpec((hidden, n_pad), lambda i: (0, 0)),     # W2 resident
            pl.BlockSpec((1, n_pad), lambda i: (0, 0)),          # b2 resident
        ],
        out_specs=pl.BlockSpec((tm, n_pad), lambda i: (i, 0)),
        compiler_params=pltpu.CompilerParams(
            dimension_semantics=("parallel",),
        ),
        cost_estimate=pl.CostEstimate(
            flops=flops, bytes_accessed=bytes_accessed, transcendentals=0),
    )(x, w1, b1, w2p, b2p)

    return out[:batch, :num_actions]


def init_params(key, obs_dim, num_actions):
    """PyTorch nn.Linear default init: U(-1/sqrt(fan_in), 1/sqrt(fan_in)).
    Weights stored (in, out) and cast to bf16; biases f32.
    W2/b2 zero-padded to ACTION_PAD columns."""
    k1, k2, k3, k4 = jax.random.split(key, 4)
    bound1 = 1.0 / jnp.sqrt(obs_dim)
    bound2 = 1.0 / jnp.sqrt(HIDDEN)
    w1 = jax.random.uniform(k1, (obs_dim, HIDDEN), jnp.float32, -bound1, bound1)
    b1 = jax.random.uniform(k2, (1, HIDDEN), jnp.float32, -bound1, bound1)
    w2 = jax.random.uniform(k3, (HIDDEN, num_actions), jnp.float32, -bound2, bound2)
    b2 = jax.random.uniform(k4, (1, num_actions), jnp.float32, -bound2, bound2)

    w2p = jnp.zeros((HIDDEN, ACTION_PAD), jnp.float32).at[:, :num_actions].set(w2)
    b2p = jnp.zeros((1, ACTION_PAD), jnp.float32).at[:, :num_actions].set(b2)
    return w1.astype(jnp.bfloat16), b1, w2p.astype(jnp.bfloat16), b2p


def _reference(x, w1, b1, w2p, b2p, num_actions):
    """Pure-JAX reference using the same bf16-operand / f32-accumulate path."""
    xb = x.astype(jnp.bfloat16)
    h = jnp.maximum(jnp.dot(xb, w1, preferred_element_type=jnp.float32) + b1, 0.0)
    out = jnp.dot(h.astype(jnp.bfloat16), w2p,
                  preferred_element_type=jnp.float32) + b2p
    return out[:, :num_actions]


if __name__ == "__main__":
    key = jax.random.PRNGKey(0)
    k_x, k_x2, k_p = jax.random.split(key, 3)

    obs_dim = 16         # obs_shape = (16,)
    num_actions = 4
    w1, b1, w2p, b2p = init_params(k_p, obs_dim, num_actions)

    # Case 1: typical RL batch -> single tile (grid=(1,)), 8-row tail pad.
    batch = 100
    x = jax.random.normal(k_x, (batch, obs_dim), jnp.float32)
    q = dqn_forward(x, w1, b1, w2p, b2p, num_actions)
    jax.block_until_ready(q)
    assert q.shape == (batch, num_actions)
    assert jnp.allclose(q, _reference(x, w1, b1, w2p, b2p, num_actions),
                        atol=1e-3, rtol=1e-3)

    # Case 2: larger batch -> even number of tiles (v7x dual-TC path).
    batch2 = 1200
    x2 = jax.random.normal(k_x2, (batch2, obs_dim), jnp.float32)
    q2 = dqn_forward(x2, w1, b1, w2p, b2p, num_actions)
    jax.block_until_ready(q2)
    assert q2.shape == (batch2, num_actions)
    assert jnp.allclose(q2, _reference(x2, w1, b1, w2p, b2p, num_actions),
                        atol=1e-3, rtol=1e-3)

    print("KERNEL_OK")
</pallas_src>

<mosaic_0001>
module attributes {stable_mosaic.version = 11 : i64} {
  func.func @dqn_mlp_kernel(%arg0: i32, %arg1: memref<104x16xf32, #tpu.memory_space<vmem>>, %arg2: memref<16x256xbf16, #tpu.memory_space<vmem>>, %arg3: memref<1x256xf32, #tpu.memory_space<vmem>>, %arg4: memref<256x128xbf16, #tpu.memory_space<vmem>>, %arg5: memref<1x128xf32, #tpu.memory_space<vmem>>, %arg6: memref<104x128xf32, #tpu.memory_space<vmem>>) attributes {dimension_semantics = [#tpu.dimension_semantics<parallel>], iteration_bounds = array<i64: 1>, scalar_prefetch = 0 : i64, scratch_operands = 0 : i64, tpu.core_type = #tpu.core_type<tc>, window_params = [{transform_indices = @transform_0, window_bounds = array<i64: 104, 16>}, {pipeline_mode = #tpu.pipeline_mode<synchronous>, transform_indices = @transform_1, window_bounds = array<i64: 16, 256>}, {pipeline_mode = #tpu.pipeline_mode<synchronous>, transform_indices = @transform_2, window_bounds = array<i64: 1, 256>}, {pipeline_mode = #tpu.pipeline_mode<synchronous>, transform_indices = @transform_3, window_bounds = array<i64: 256, 128>}, {pipeline_mode = #tpu.pipeline_mode<synchronous>, transform_indices = @transform_4, window_bounds = array<i64: 1, 128>}, {transform_indices = @transform_5, window_bounds = array<i64: 104, 128>}]} {
    %c0 = arith.constant 0 : index
    %c0_0 = arith.constant 0 : index
    %0 = vector.load %arg1[%c0, %c0_0] : memref<104x16xf32, #tpu.memory_space<vmem>>, vector<104x16xf32>
    %1 = arith.truncf %0 : vector<104x16xf32> to vector<104x16xbf16>
    %c0_1 = arith.constant 0 : index
    %c0_2 = arith.constant 0 : index
    %2 = vector.load %arg2[%c0_1, %c0_2] : memref<16x256xbf16, #tpu.memory_space<vmem>>, vector<16x256xbf16>
    %cst = arith.constant dense<0.000000e+00> : vector<104x256xf32>
    %3 = tpu.matmul %1, %2, %cst {dimension_numbers = #tpu.dot_dimension_numbers<[1], [0], [0], [1], [0, 0, 1, 1], [], []>} : vector<104x16xbf16>, vector<16x256xbf16>, vector<104x256xf32> -> vector<104x256xf32>
    %c0_3 = arith.constant 0 : index
    %c0_4 = arith.constant 0 : index
    %4 = vector.load %arg3[%c0_3, %c0_4] : memref<1x256xf32, #tpu.memory_space<vmem>>, vector<1x256xf32>
    %5 = vector.broadcast %4 : vector<1x256xf32> to vector<104x256xf32>
    %6 = arith.addf %3, %5 : vector<104x256xf32>
    %cst_5 = arith.constant 0.000000e+00 : f32
    %7 = vector.broadcast %cst_5 : f32 to vector<104x256xf32>
    %8 = arith.maximumf %6, %7 : vector<104x256xf32>
    %9 = arith.truncf %8 : vector<104x256xf32> to vector<104x256xbf16>
    %c0_6 = arith.constant 0 : index
    %c0_7 = arith.constant 0 : index
    %10 = vector.load %arg4[%c0_6, %c0_7] : memref<256x128xbf16, #tpu.memory_space<vmem>>, vector<256x128xbf16>
    %cst_8 = arith.constant dense<0.000000e+00> : vector<104x128xf32>
    %11 = tpu.matmul %9, %10, %cst_8 {dimension_numbers = #tpu.dot_dimension_numbers<[1], [0], [0], [1], [0, 0, 1, 1], [], []>} : vector<104x256xbf16>, vector<256x128xbf16>, vector<104x128xf32> -> vector<104x128xf32>
    %c0_9 = arith.constant 0 : index
    %c0_10 = arith.constant 0 : index
    %12 = vector.load %arg5[%c0_9, %c0_10] : memref<1x128xf32, #tpu.memory_space<vmem>>, vector<1x128xf32>
    %13 = vector.broadcast %12 : vector<1x128xf32> to vector<104x128xf32>
    %14 = arith.addf %11, %13 : vector<104x128xf32>
    %c0_11 = arith.constant 0 : index
    %c0_12 = arith.constant 0 : index
    %15 = vector.load %arg6[%c0_11, %c0_12] : memref<104x128xf32, #tpu.memory_space<vmem>>, vector<104x128xf32>
    tpu.vector_store %arg6[%c0_11, %c0_12], %14 {strides = array<i32>} : memref<104x128xf32, #tpu.memory_space<vmem>>, vector<104x128xf32>,
    return
  }
  func.func @transform_0(%arg0: i32) -> (i32, i32) {
    %c0_i32 = arith.constant 0 : i32
    %c0_i32_0 = arith.constant 0 : i32
    return %arg0, %c0_i32 : i32, i32
  }
  func.func @transform_1(%arg0: i32) -> (i32, i32) {
    %c0_i32 = arith.constant 0 : i32
    %c0_i32_0 = arith.constant 0 : i32
    %c0_i32_1 = arith.constant 0 : i32
    return %c0_i32, %c0_i32_0 : i32, i32
  }
  func.func @transform_2(%arg0: i32) -> (i32, i32) {
    %c0_i32 = arith.constant 0 : i32
    %c0_i32_0 = arith.constant 0 : i32
    %c0_i32_1 = arith.constant 0 : i32
    return %c0_i32, %c0_i32_0 : i32, i32
  }
  func.func @transform_3(%arg0: i32) -> (i32, i32) {
    %c0_i32 = arith.constant 0 : i32
    %c0_i32_0 = arith.constant 0 : i32
    %c0_i32_1 = arith.constant 0 : i32
    return %c0_i32, %c0_i32_0 : i32, i32
  }
  func.func @transform_4(%arg0: i32) -> (i32, i32) {
    %c0_i32 = arith.constant 0 : i32
    %c0_i32_0 = arith.constant 0 : i32
    %c0_i32_1 = arith.constant 0 : i32
    return %c0_i32, %c0_i32_0 : i32, i32
  }
  func.func @transform_5(%arg0: i32) -> (i32, i32) {
    %c0_i32 = arith.constant 0 : i32
    %c0_i32_0 = arith.constant 0 : i32
    return %arg0, %c0_i32 : i32, i32
  }
}

</mosaic_0001>

<bundles_post_ra>
// kernel: tpu_custom_call.1
= control target key start
LH: loop header
LB: loop body
LE: loop exit
PB: predicated region body
PF: predicated region fallthrough
CT: control target
= control target key end

     0   :  { %10 = vsyncpa [#allocation3], 0  ;;  %s819_s0 = inlined_call_operand.vmem [shape: f32[104,16], index: 0, kind: input, shape index: {}]   ;;  %s820_s1 = inlined_call_operand.vmem [shape: bf16[16,256], index: 1, kind: input, shape index: {}]   ;;  %s821_s2 = inlined_call_operand.vmem [shape: f32[1,256], index: 2, kind: input, shape index: {}]   ;;  %s822_s3 = inlined_call_operand.hbm [shape: bf16[256,128], index: 3, kind: input, shape index: {}]   ;;  %s823_s4 = inlined_call_operand.vmem [shape: f32[1,128], index: 4, kind: input, shape index: {}]   ;;  %s824_s5 = inlined_call_operand.hbm [shape: f32[104,128], index: 5, kind: output, shape index: {}]  }
   0x1   :  { %11 = vsyncpa [#allocation4], 0  ;;  %s666_s18 = smov [#allocation2]  }
   0x2   :  { %s23_s19 = sshll.u32 %s666_s18, 4  ;;  %s24_s19 = int_to_ptr.vmem [resolvable:$true] %s23_s19 }
   0x3   :  { %s630_s20 = scalar_lea.vmem %s24_s19, 2048  ;;  %p635_p1 = scmp.lt.s32.totalorder %s24_s19, %s24_s19 }
   0x4   :  { %p631_p0 = scmp.ne.s32.totalorder %s24_s19, %s630_s20  ;;  %p636_p2 = scmp.lt.s32.totalorder %s630_s20, %s630_s20 }
   0x6   :  { %p637_p3 = por %p636_p2, %p635_p1 }
   0x8   :  { %p638_p4 = pnand %p637_p3, %p631_p0 }
   0xa   :  { %641 = shalt.err (!%p638_p4)
}
   0xb   :  { %s667_s21 = smov 64   ;;  %s668_s22 = smov 4  }
   0xc   :  { %29 = dma.hbm_to_vmem [thread:$0]  %s822_s3, 2048, %s24_s19, [#allocation3], %s667_s21, %s667_s21, %s668_s22  }
   0xd   :  { %662 = dma.done.wait [#allocation3], 2048  }
   0xe   :  { %663 = vsyncadd [#allocation3], 4294965248  ;;  %v669_v0 = vmov 0   ;;  %v603_v1 = vld [vmem:[%s820_s1 + $0x4] ss:$8 sps:$4 sm:$0xff]   ;;  %vm80_vm0 = vcmask 130048   ;;  %v60_v39 = vlaneseq }
   0xf   :  { %134 = vmatprep.mubr.bf16.mxu0 %v669_v0  ;;  %v605_v2 = vld [vmem:[%s820_s1] ss:$8 sps:$4 sm:$0xff]   ;;  %116 = vmatprep.subr.bf16.mxu0 %v603_v1  ;;  %v38_v6 = vld [vmem:[%s819_s0 + $0x10] sm:$0xff]  ;;  %v39_v7 = vld [vmem:[%s819_s0 + $0x18] sm:$0xff] }
  0x10   :  { %v36_v3 = vld [vmem:[%s819_s0] sm:$0xff]  ;;  %v37_v4 = vld [vmem:[%s819_s0 + $0x8] sm:$0xff]  ;;  %117 = vmatpush1.bf16.msra.mxu0 %v605_v2  ;;  %v606_v8 = vld [vmem:[#allocation2 + $0x78] sm:$0xff]   ;;  %v50_v12 = vpack.c.bf16 %v39_v7, %v38_v6  ;;  %v61_v40 = vshrl.u32 %v60_v39, 7 }
  0x11   :  { %v49_v5 = vpack.c.bf16 %v37_v4, %v36_v3  ;;  %v607_v9 = vld [vmem:[#allocation2 + $0x38] sm:$0xff]   ;;  %522 = vmatprep.subr.bf16.mxu0 %v606_v8  ;;  %v608_v10 = vld [vmem:[#allocation2 + $0x70] sm:$0xff]   ;;  %580 = vmatprep.subr.bf16.mxu1 %v606_v8  ;;  %v610_v13 = vld [vmem:[#allocation2 + $0x68] sm:$0xff]  }
  0x12   :  { %v609_v11 = vld [vmem:[#allocation2 + $0x30] sm:$0xff]   ;;  %588 = vmatpush3.bf16.msra.mxu1 %v607_v9  ;;  %v40_v14 = vld [vmem:[%s819_s0 + $0x20] sm:$0xff]  ;;  %v611_v15 = vld [vmem:[#allocation2 + $0x28] sm:$0xff]   ;;  %v66_v41 = vsub.s32 1, %v61_v40  ;;  %v62_v42 = vsub.s32 0, %v61_v40 }
  0x13   :  { %498 = vmatmul.mubr.msk.bf16.vlgmr.msra.gmra.mxu0 %vm80_vm0, %v49_v5  ;;  %581 = vmatprep.subr.bf16.mxu1 %v608_v10  ;;  %v612_v16 = vld [vmem:[#allocation2 + $0x60] sm:$0xff]   ;;  %v41_v17 = vld [vmem:[%s819_s0 + $0x28] sm:$0xff]  ;;  %v614_v19 = vld [vmem:[#allocation2 + $0x58] sm:$0xff]  }
  0x14   :  { %144 = vmatprep.mubr.bf16.mxu0 %v669_v0  ;;  %523 = vmatpush3.bf16.msra.mxu0 %v607_v9  ;;  %v613_v18 = vld [vmem:[#allocation2 + $0x20] sm:$0xff]   ;;  %v51_v20 = vpack.c.bf16 %v41_v17, %v40_v14  ;;  %v615_v21 = vld [vmem:[#allocation2 + $0x18] sm:$0xff]   ;;  %v42_v22 = vld [vmem:[%s819_s0 + $0x30] sm:$0xff] }
  0x15   :  { %524 = vmatprep.subr.bf16.mxu0 %v608_v10  ;;  %v43_v23 = vld [vmem:[%s819_s0 + $0x38] sm:$0xff]  ;;  %v44_v25 = vld [vmem:[%s819_s0 + $0x40] sm:$0xff]  ;;  %v45_v26 = vld [vmem:[%s819_s0 + $0x48] sm:$0xff] }
  0x16   :  { %589 = vmatpush3.bf16.msra.mxu1 %v609_v11  ;;  %v52_v24 = vpack.c.bf16 %v43_v23, %v42_v22  ;;  %v53_v27 = vpack.c.bf16 %v45_v26, %v44_v25  ;;  %v46_v28 = vld [vmem:[%s819_s0 + $0x50] sm:$0xff]  ;;  %v47_v29 = vld [vmem:[%s819_s0 + $0x58] sm:$0xff]  ;;  %v48_v31 = vld [vmem:[%s819_s0 + $0x60] sm:$0xff] }
  0x17   :  { %582 = vmatprep.subr.bf16.mxu1 %v610_v13  ;;  %v54_v30 = vpack.c.bf16 %v47_v29, %v46_v28  ;;  %v55_v32 = vpack.c.bf16 %v48_v31, %v48_v31  ;;  %v616_v33 = vld [vmem:[#allocation2 + $0x50] sm:$0xff]   ;;  %v618_v35 = vld [vmem:[#allocation2 + $0x48] sm:$0xff]   ;;  %v620_v37 = vld [vmem:[#allocation2 + $0x40] sm:$0xff]  }
  0x18   :  { %525 = vmatpush3.bf16.msra.mxu0 %v609_v11  ;;  %v617_v34 = vld [vmem:[#allocation2 + $0x10] sm:$0xff]   ;;  %v619_v36 = vld [vmem:[#allocation2 + $0x8] sm:$0xff]   ;;  %v621_v38 = vld [vmem:[#allocation2] sm:$0xff]  }
  0x19   :  { %526 = vmatprep.subr.bf16.mxu0 %v610_v13  ;;  %v58_v43 = vld [vmem:[%s821_s2] sm:$0x3] }
  0x1a   :  { %590 = vmatpush3.bf16.msra.mxu1 %v611_v15  ;;  %v768_v45 = vrot.slane %v58_v43, %v66_v41  ;;  %v770_v46 = vrot.slane %v58_v43, %v62_v42 }
  0x1b   :  { %499 = vmatmul.mubr.msk.bf16.gmra.mxu0 %vm80_vm0, %v50_v12  ;;  %583 = vmatprep.subr.bf16.mxu1 %v612_v16 }
  0x1c   :  { %154 = vmatprep.mubr.bf16.mxu0 %v669_v0  ;;  %527 = vmatpush3.bf16.msra.mxu0 %v611_v15 }
  0x1d   :  { %528 = vmatprep.subr.bf16.mxu0 %v612_v16 }
  0x1e   :  { %591 = vmatpush3.bf16.msra.mxu1 %v613_v18 }
  0x1f   :  { %584 = vmatprep.subr.bf16.mxu1 %v614_v19 }
  0x20   :  { %529 = vmatpush3.bf16.msra.mxu0 %v613_v18 }
  0x21   :  { %530 = vmatprep.subr.bf16.mxu0 %v614_v19 }
  0x22   :  { %592 = vmatpush3.bf16.msra.mxu1 %v615_v21 }
  0x23   :  { %500 = vmatmul.mubr.msk.bf16.gmra.mxu0 %vm80_vm0, %v51_v20  ;;  %585 = vmatprep.subr.bf16.mxu1 %v616_v33 }
  0x24   :  { %164 = vmatprep.mubr.bf16.mxu0 %v669_v0  ;;  %531 = vmatpush3.bf16.msra.mxu0 %v615_v21 }
  0x25   :  { %532 = vmatprep.subr.bf16.mxu0 %v616_v33 }
  0x26   :  { %593 = vmatpush3.bf16.msra.mxu1 %v617_v34 }
  0x27   :  { %586 = vmatprep.subr.bf16.mxu1 %v618_v35 }
  0x28   :  { %533 = vmatpush3.bf16.msra.mxu0 %v617_v34 }
  0x29   :  { %534 = vmatprep.subr.bf16.mxu0 %v618_v35 }
  0x2a   :  { %594 = vmatpush3.bf16.msra.mxu1 %v619_v36 }
  0x2b   :  { %501 = vmatmul.mubr.msk.bf16.gmra.mxu0 %vm80_vm0, %v52_v24  ;;  %587 = vmatprep.subr.bf16.mxu1 %v620_v37 }
  0x2c   :  { %174 = vmatprep.mubr.bf16.mxu0 %v669_v0  ;;  %535 = vmatpush3.bf16.msra.mxu0 %v619_v36 }
  0x2d   :  { %536 = vmatprep.subr.bf16.mxu0 %v620_v37 }
  0x2e   :  { %595 = vmatpush3.bf16.msra.mxu1 %v621_v38 }
  0x30   :  { %537 = vmatpush3.bf16.msra.mxu0 %v621_v38 }
  0x33   :  { %502 = vmatmul.mubr.msk.bf16.gmra.mxu0 %vm80_vm0, %v53_v27 }
  0x34   :  { %184 = vmatprep.mubr.bf16.mxu0 %v669_v0 }
  0x3b   :  { %503 = vmatmul.mubr.msk.bf16.gmra.mxu0 %vm80_vm0, %v54_v30 }
  0x3c   :  { %194 = vmatprep.mubr.bf16.mxu0 %v669_v0 }
  0x43   :  { %504 = vmatmul.mubr.msk.bf16.gmra.mxu0 %vm80_vm0, %v55_v32 }
  0xd3   :  { %v136_v44 = vpop.f32.mrf.mxu0 }
  0xd4   :  { %v137_v51 = vadd.f32 %v136_v44, %v770_v46 }
  0xd5   :  { %v138_v47 = vpop.f32.mrf.mxu0 }
  0xd6   :  { %v139_v49 = vadd.f32 %v138_v47, %v768_v45  ;;  %v203_v58 = vmax.f32 %v137_v51, 0.0 }
  0xd7   :  { %v140_v48 = vpop.f32.mrf.mxu0 }
  0xd8   :  { %v141_v50 = vadd.f32 %v140_v48, %v770_v46  ;;  %v204_v56 = vmax.f32 %v139_v49, 0.0 }
  0xd9   :  { %v142_v52 = vpop.f32.mrf.mxu0 }
  0xda   :  { %v143_v53 = vadd.f32 %v142_v52, %v768_v45  ;;  %v205_v54 = vmax.f32 %v141_v50, 0.0 }
  0xdb   :  { %v146_v55 = vpop.f32.mrf.mxu0 }
  0xdc   :  { %v206_v57 = vmax.f32 %v143_v53, 0.0  ;;  %v229_v61 = vpack.c.bf16 %v205_v54, %v203_v58  ;;  %v147_v1 = vadd.f32 %v146_v55, %v770_v46 }
  0xdd   :  { %v148_v59 = vpop.f32.mrf.mxu0 }
  0xde   :  { %v230_v60 = vpack.c.bf16 %v206_v57, %v204_v56  ;;  %v149_v63 = vadd.f32 %v148_v59, %v768_v45  ;;  %v207_v8 = vmax.f32 %v147_v1, 0.0 }
  0xdf   :  { %v150_v62 = vpop.f32.mrf.mxu0 }
  0xe0   :  { %v151_v0 = vadd.f32 %v150_v62, %v770_v46  ;;  %410 = vmatprep.mubr.bf16.mxu0 %v230_v60  ;;  %v208_v6 = vmax.f32 %v149_v63, 0.0 }
  0xe1   :  { %v152_v2 = vpop.f32.mrf.mxu0  ;;  %411 = vmatmul.mubr.bf16.vlgmr.msra.gmra.mxu0 %v229_v61 }
  0xe2   :  { %v153_v3 = vadd.f32 %v152_v2, %v768_v45  ;;  %v209_v4 = vmax.f32 %v151_v0, 0.0 }
  0xe3   :  { %v156_v5 = vpop.f32.mrf.mxu0 }
  0xe4   :  { %v210_v7 = vmax.f32 %v153_v3, 0.0  ;;  %v231_v11 = vpack.c.bf16 %v209_v4, %v207_v8  ;;  %v157_v15 = vadd.f32 %v156_v5, %v770_v46 }
  0xe5   :  { %v158_v9 = vpop.f32.mrf.mxu0 }
  0xe6   :  { %v232_v10 = vpack.c.bf16 %v210_v7, %v208_v6  ;;  %v159_v13 = vadd.f32 %v158_v9, %v768_v45  ;;  %v211_v22 = vmax.f32 %v157_v15, 0.0  ;;  %v801_v15 = vld [vmem:[%s823_s4] ss:$0 sm:$0xff]  ;;  %s670_s4 = smov [#allocation5]  }
  0xe7   :  { %v160_v12 = vpop.f32.mrf.mxu0  ;;  %s484_s30 = sshll.u32 %s670_s4, 4  ;;  %s485_s30 = int_to_ptr.vmem [resolvable:$true] %s484_s30 }
  0xe8   :  { %v161_v14 = vadd.f32 %v160_v12, %v770_v46  ;;  %418 = vmatprep.mubr.bf16.mxu1 %v232_v10  ;;  %v212_v20 = vmax.f32 %v159_v13, 0.0  ;;  %s642_s6 = scalar_lea.vmem %s485_s30, 1664  ;;  %p647_p6 = scmp.lt.s32.totalorder %s485_s30, %s485_s30 }
  0xe9   :  { %v162_v16 = vpop.f32.mrf.mxu0  ;;  %419 = vmatmul.mubr.bf16.vlgmr.msra.gmra.mxu1 %v231_v11  ;;  %p643_p5 = scmp.ne.s32.totalorder %s485_s30, %s642_s6  ;;  %p648_p7 = scmp.lt.s32.totalorder %s642_s6, %s642_s6 }
  0xea   :  { %v163_v17 = vadd.f32 %v162_v16, %v768_v45  ;;  %v213_v18 = vmax.f32 %v161_v14, 0.0 }
  0xeb   :  { %v166_v19 = vpop.f32.mrf.mxu0  ;;  %p649_p8 = por %p648_p7, %p647_p6 }
  0xec   :  { %v214_v21 = vmax.f32 %v163_v17, 0.0  ;;  %v233_v25 = vpack.c.bf16 %v213_v18, %v211_v22  ;;  %v167_v29 = vadd.f32 %v166_v19, %v770_v46 }
  0xed   :  { %v168_v23 = vpop.f32.mrf.mxu0  ;;  %p650_p9 = pnand %p649_p8, %p643_p5 }
  0xee   :  { %v234_v24 = vpack.c.bf16 %v214_v21, %v212_v20  ;;  %v169_v27 = vadd.f32 %v168_v23, %v768_v45  ;;  %v215_v36 = vmax.f32 %v167_v29, 0.0 }
  0xef   :  { %v170_v26 = vpop.f32.mrf.mxu0 }
  0xf0   :  { %v171_v28 = vadd.f32 %v170_v26, %v770_v46  ;;  %426 = vmatprep.mubr.bf16.mxu1 %v234_v24  ;;  %v216_v34 = vmax.f32 %v169_v27, 0.0 }
  0xf1   :  { %v172_v30 = vpop.f32.mrf.mxu0  ;;  %427 = vmatmul.mubr.bf16.gmra.mxu1 %v233_v25 }
  0xf2   :  { %v173_v31 = vadd.f32 %v172_v30, %v768_v45  ;;  %v217_v32 = vmax.f32 %v171_v28, 0.0 }
  0xf3   :  { %v176_v33 = vpop.f32.mrf.mxu0 }
  0xf4   :  { %v218_v35 = vmax.f32 %v173_v31, 0.0  ;;  %v235_v39 = vpack.c.bf16 %v217_v32, %v215_v36  ;;  %v177_v43 = vadd.f32 %v176_v33, %v770_v46 }
  0xf5   :  { %v178_v37 = vpop.f32.mrf.mxu0 }
  0xf6   :  { %v236_v38 = vpack.c.bf16 %v218_v35, %v216_v34  ;;  %v179_v41 = vadd.f32 %v178_v37, %v768_v45  ;;  %v219_v52 = vmax.f32 %v177_v43, 0.0 }
  0xf7   :  { %v180_v40 = vpop.f32.mrf.mxu0 }
  0xf8   :  { %v181_v42 = vadd.f32 %v180_v40, %v770_v46  ;;  %434 = vmatprep.mubr.bf16.mxu1 %v236_v38  ;;  %v220_v50 = vmax.f32 %v179_v41, 0.0 }
  0xf9   :  { %v182_v44 = vpop.f32.mrf.mxu0  ;;  %435 = vmatmul.mubr.bf16.gmra.mxu1 %v235_v39 }
  0xfa   :  { %v183_v47 = vadd.f32 %v182_v44, %v768_v45  ;;  %v221_v48 = vmax.f32 %v181_v42, 0.0 }
  0xfb   :  { %v186_v49 = vpop.f32.mrf.mxu0 }
  0xfc   :  { %v222_v51 = vmax.f32 %v183_v47, 0.0  ;;  %v237_v55 = vpack.c.bf16 %v221_v48, %v219_v52  ;;  %v187_v59 = vadd.f32 %v186_v49, %v770_v46 }
  0xfd   :  { %v188_v53 = vpop.f32.mrf.mxu0 }
  0xfe   :  { %v238_v54 = vpack.c.bf16 %v222_v51, %v220_v50  ;;  %v189_v57 = vadd.f32 %v188_v53, %v768_v45  ;;  %v223_v2 = vmax.f32 %v187_v59, 0.0 }
  0xff   :  { %v190_v56 = vpop.f32.mrf.mxu0 }
 0x100   :  { %v191_v58 = vadd.f32 %v190_v56, %v770_v46  ;;  %442 = vmatprep.mubr.bf16.mxu1 %v238_v54  ;;  %v224_v0 = vmax.f32 %v189_v57, 0.0 }
 0x101   :  { %v192_v60 = vpop.f32.mrf.mxu0  ;;  %443 = vmatmul.mubr.bf16.gmra.mxu1 %v237_v55 }
 0x102   :  { %v193_v61 = vadd.f32 %v192_v60, %v768_v45  ;;  %v225_v62 = vmax.f32 %v191_v58, 0.0 }
 0x103   :  { %v196_v63 = vpop.f32.mrf.mxu0 }
 0x104   :  { %v226_v1 = vmax.f32 %v193_v61, 0.0  ;;  %v239_v6 = vpack.c.bf16 %v225_v62, %v223_v2  ;;  %v197_v7 = vadd.f32 %v196_v63, %v770_v46 }
 0x105   :  { %v198_v3 = vpop.f32.mrf.mxu0 }
 0x106   :  { %v240_v4 = vpack.c.bf16 %v226_v1, %v224_v0  ;;  %v199_v5 = vadd.f32 %v198_v3, %v768_v45  ;;  %v227_v12 = vmax.f32 %v197_v7, 0.0 }
 0x107   :  { %v200_v8 = vpop.f32.mrf.mxu0 }
 0x108   :  { %v228_v9 = vmax.f32 %v199_v5, 0.0  ;;  %450 = vmatprep.mubr.bf16.mxu1 %v240_v4  ;;  %v241_v13 = vpack.c.bf16 %v227_v12, %v227_v12 }
 0x109   :  { %v201_v10 = vpop.f32.mrf.mxu0  ;;  %451 = vmatmul.mubr.bf16.gmra.mxu1 %v239_v6 }
 0x10a   :  { %v242_v11 = vpack.c.bf16 %v228_v9, %v228_v9 }
 0x10c   :  { %458 = vmatprep.mubr.bf16.mxu1 %v242_v11 }
 0x111   :  { %459 = vmatmul.mubr.bf16.gmra.mxu1 %v241_v13 }
 0x1a1   :  { %v538_v14 = vpop.f32.mrf.mxu0 }
 0x1a3   :  { %v539_v45 = vpop.f32.mrf.mxu0 }
 0x1a4   :  { %v540_v16 = vadd.f32 %v539_v45, %v538_v14 }
 0x1a5   :  { %v541_v17 = vpop.f32.mrf.mxu0 }
 0x1a6   :  { %v413_v46 = vadd.f32 %v540_v16, %v801_v15 }
 0x1a7   :  { %v542_v18 = vpop.f32.mrf.mxu0 }
 0x1a8   :  { %466 = vst [vmem:[#allocation5] sm:$0xff] %v413_v46  ;;  %v543_v19 = vadd.f32 %v542_v18, %v541_v17 }
 0x1a9   :  { %v544_v20 = vpop.f32.mrf.mxu1 }
 0x1aa   :  { %v416_v21 = vadd.f32 %v543_v19, %v801_v15 }
 0x1ab   :  { %v545_v22 = vpop.f32.mrf.mxu1 }
 0x1ac   :  { %467 = vst [vmem:[#allocation5 + $0x8] sm:$0xff] %v416_v21  ;;  %v546_v23 = vadd.f32 %v545_v22, %v544_v20 }
 0x1ad   :  { %v547_v24 = vpop.f32.mrf.mxu1 }
 0x1ae   :  { %v421_v25 = vadd.f32 %v546_v23, %v801_v15 }
 0x1af   :  { %v548_v26 = vpop.f32.mrf.mxu1 }
 0x1b0   :  { %468 = vst [vmem:[#allocation5 + $0x10] sm:$0xff] %v421_v25  ;;  %v549_v27 = vadd.f32 %v548_v26, %v547_v24 }
 0x1b1   :  { %v550_v28 = vpop.f32.mrf.mxu1 }
 0x1b2   :  { %v424_v29 = vadd.f32 %v549_v27, %v801_v15 }
 0x1b3   :  { %v551_v30 = vpop.f32.mrf.mxu1 }
 0x1b4   :  { %469 = vst [vmem:[#allocation5 + $0x18] sm:$0xff] %v424_v29  ;;  %v552_v31 = vadd.f32 %v551_v30, %v550_v28 }
 0x1b5   :  { %v553_v32 = vpop.f32.mrf.mxu1 }
 0x1b6   :  { %v429_v33 = vadd.f32 %v552_v31, %v801_v15 }
 0x1b7   :  { %v554_v34 = vpop.f32.mrf.mxu1 }
 0x1b8   :  { %470 = vst [vmem:[#allocation5 + $0x20] sm:$0xff] %v429_v33  ;;  %v555_v35 = vadd.f32 %v554_v34, %v553_v32 }
 0x1b9   :  { %v556_v36 = vpop.f32.mrf.mxu1 }
 0x1ba   :  { %v432_v37 = vadd.f32 %v555_v35, %v801_v15 }
 0x1bb   :  { %v557_v38 = vpop.f32.mrf.mxu1 }
 0x1bc   :  { %471 = vst [vmem:[#allocation5 + $0x28] sm:$0xff] %v432_v37  ;;  %v558_v39 = vadd.f32 %v557_v38, %v556_v36 }
 0x1bd   :  { %v559_v40 = vpop.f32.mrf.mxu1 }
 0x1be   :  { %v437_v41 = vadd.f32 %v558_v39, %v801_v15 }
 0x1bf   :  { %v560_v42 = vpop.f32.mrf.mxu1 }
 0x1c0   :  { %472 = vst [vmem:[#allocation5 + $0x30] sm:$0xff] %v437_v41  ;;  %v561_v43 = vadd.f32 %v560_v42, %v559_v40 }
 0x1c1   :  { %v562_v44 = vpop.f32.mrf.mxu1 }
 0x1c2   :  { %v440_v47 = vadd.f32 %v561_v43, %v801_v15 }
 0x1c3   :  { %v563_v48 = vpop.f32.mrf.mxu1 }
 0x1c4   :  { %473 = vst [vmem:[#allocation5 + $0x38] sm:$0xff] %v440_v47  ;;  %v564_v49 = vadd.f32 %v563_v48, %v562_v44 }
 0x1c5   :  { %v565_v50 = vpop.f32.mrf.mxu1 }
 0x1c6   :  { %v445_v51 = vadd.f32 %v564_v49, %v801_v15 }
 0x1c7   :  { %v566_v52 = vpop.f32.mrf.mxu1 }
 0x1c8   :  { %474 = vst [vmem:[#allocation5 + $0x40] sm:$0xff] %v445_v51  ;;  %v567_v53 = vadd.f32 %v566_v52, %v565_v50 }
 0x1c9   :  { %v568_v54 = vpop.f32.mrf.mxu1 }
 0x1ca   :  { %v448_v55 = vadd.f32 %v567_v53, %v801_v15 }
 0x1cb   :  { %v569_v56 = vpop.f32.mrf.mxu1 }
 0x1cc   :  { %475 = vst [vmem:[#allocation5 + $0x48] sm:$0xff] %v448_v55  ;;  %v570_v57 = vadd.f32 %v569_v56, %v568_v54 }
 0x1cd   :  { %v571_v58 = vpop.f32.mrf.mxu1 }
 0x1ce   :  { %v453_v59 = vadd.f32 %v570_v57, %v801_v15 }
 0x1cf   :  { %v572_v60 = vpop.f32.mrf.mxu1 }
 0x1d0   :  { %476 = vst [vmem:[#allocation5 + $0x50] sm:$0xff] %v453_v59  ;;  %v573_v61 = vadd.f32 %v572_v60, %v571_v58 }
 0x1d1   :  { %v574_v62 = vpop.f32.mrf.mxu1 }
 0x1d2   :  { %v456_v63 = vadd.f32 %v573_v61, %v801_v15 }
 0x1d3   :  { %v575_v0 = vpop.f32.mrf.mxu1 }
 0x1d4   :  { %477 = vst [vmem:[#allocation5 + $0x58] sm:$0xff] %v456_v63  ;;  %v576_v1 = vadd.f32 %v575_v0, %v574_v62 }
 0x1d5   :  { %v577_v2 = vpop.f32.mrf.mxu1 }
 0x1d6   :  { %v461_v3 = vadd.f32 %v576_v1, %v801_v15 }
 0x1d7   :  { %v578_v4 = vpop.f32.mrf.mxu1 }
 0x1d8   :  { %478 = vst [vmem:[#allocation5 + $0x60] sm:$0xff] %v461_v3 }
 0x1d9   :  { %653 = shalt.err (!%p650_p9)
}
 0x1da   :  { %s671_s7 = smov 128   ;;  %s672_s3 = smov 8  }
 0x1db   :  { %490 = dma.vmem_to_hbm [thread:$0]  %s485_s30, 1664, %s824_s5, [#allocation4], %s671_s7, %s671_s7, %s672_s3  }
 0x1dc   :  { %664 = dma.done.wait [#allocation4], 1664  }
 0x1dd   :  { %665 = vsyncadd [#allocation4], 4294965632 }
 0x1de   :  { %494 = vsyncpa [#allocation3], 1 }
 0x1df   :  { %495 = vsyncpa [#allocation4], 1 }

</bundles_post_ra>
